<compile_context>
chip_gen: v7x
topology: tpu7x:2x2x1
jax: 0.10.0
libtpu: 0.0.40
codegen_flags: <defaults>
</compile_context>

<pallas_src>
import jax
import jax.numpy as jnp
from jax.experimental import pallas as pl
from jax.experimental.pallas import tpu as pltpu

_LANE = 128
_LANE_COLS = 2048            # lane-dense column width (multiple of 128)
_VMEM_LIMIT_BYTES = 48 << 20 # safe on v5e/v6e (128 MiB phys) and v7x (64 MiB phys)


def _is_v7x() -> bool:
    """Best-effort detection of a v7x TensorCore (bigger HBM BW -> bigger tiles)."""
    try:
        kind = jax.devices()[0].device_kind.lower().replace(" ", "").replace("-", "")
        return ("v7" in kind) or ("tpu7" in kind)
    except Exception:
        return False


def _degrade_kernel(x_ref, o_ref):
    # clamp to [0, 1]  (clamp(min=0, max=1) inside the file cycle)
    x = jnp.clip(x_ref[...].astype(jnp.float32), 0.0, 1.0)
    # 8-bit PNG quantization round-trip: floor(x*255) / 255
    o_ref[...] = (jnp.floor(x * 255.0) * (1.0 / 255.0)).astype(o_ref.dtype)


def _tiled_call(x2d, block_rows, block_cols, donate_input):
    rows, cols = x2d.shape
    grid = (pl.cdiv(rows, block_rows), pl.cdiv(cols, block_cols))
    return pl.pallas_call(
        _degrade_kernel,
        out_shape=jax.ShapeDtypeStruct((rows, cols), x2d.dtype),
        grid=grid,
        in_specs=[pl.BlockSpec((block_rows, block_cols), lambda i, j: (i, j))],
        out_specs=pl.BlockSpec((block_rows, block_cols), lambda i, j: (i, j)),
        compiler_params=pltpu.CompilerParams(
            dimension_semantics=("parallel", "parallel"),
            vmem_limit_bytes=_VMEM_LIMIT_BYTES,
        ),
        input_output_aliases=({0: 0} if donate_input else {}),
    )(x2d)


def degradation_forward(x: jax.Array, donate_input: bool = False) -> jax.Array:
    """Pallas equivalent of Degradation.forward (file-cycle degradation)."""
    orig_shape = x.shape
    total = x.size
    if total == 0:
        return x

    target_tile_bytes = (8 << 20) if _is_v7x() else (4 << 20)
    itemsize = max(int(x.dtype.itemsize), 1)

    if total % _LANE_COLS == 0:
        # Lane-dense fast path: free flatten-reshape to (rows, 2048).
        rows, cols = total // _LANE_COLS, _LANE_COLS
        block_cols = cols
    else:
        # Ragged path: collapse leading dims, keep the trailing dim as lanes.
        # No pad, no slice -> partial boundary blocks handle the edges.
        cols = orig_shape[-1] if x.ndim >= 2 else total
        rows = total // cols
        block_cols = cols if cols <= _LANE_COLS else _LANE_COLS

    x2d = x.reshape(rows, cols)

    # Pick block_rows so one tile is ~target_tile_bytes of VMEM (lane-padded),
    # rounded to the sublane-packing multiple of the container dtype.
    lane_padded_cols = pl.cdiv(block_cols, _LANE) * _LANE
    bytes_per_block_row = lane_padded_cols * itemsize
    sub_mult = max(8, 32 // itemsize)  # 8 (f32) / 16 (bf16) / 32 (int8)
    block_rows = target_tile_bytes // bytes_per_block_row
    block_rows = max(sub_mult, (block_rows // sub_mult) * sub_mult)
    if block_rows >= rows:
        block_rows = rows  # full-dim block (always legal, any row count)

    out2d = _tiled_call(x2d, block_rows, block_cols, donate_input)
    return out2d.reshape(orig_shape)


if __name__ == "__main__":
    key = jax.random.PRNGKey(0)
    # Small image batch consistent with the module (NCHW image tensor).
    x = jax.random.uniform(key, (2, 4, 16, 16), dtype=jnp.float32,
                           minval=-0.25, maxval=1.25)
    y = jax.block_until_ready(degradation_forward(x))
    ref = jnp.floor(jnp.clip(x, 0.0, 1.0) * 255.0) / 255.0
    assert y.shape == x.shape and y.dtype == x.dtype
    assert jnp.max(jnp.abs(y - ref)) < 1e-6

    # Ragged shape (element count not a multiple of 2048) -> no pad/slice path.
    x2 = jax.random.uniform(jax.random.PRNGKey(1), (1, 3, 17, 19),
                            dtype=jnp.float32, minval=-0.25, maxval=1.25)
    y2 = jax.block_until_ready(degradation_forward(x2))
    ref2 = jnp.floor(jnp.clip(x2, 0.0, 1.0) * 255.0) / 255.0
    assert y2.shape == x2.shape
    assert jnp.max(jnp.abs(y2 - ref2)) < 1e-6

    # Moderate lane-dense shape exercising a partial boundary row-block.
    x3 = jax.random.uniform(jax.random.PRNGKey(2), (1, 1, 1000, 2048),
                            dtype=jnp.float32, minval=-0.25, maxval=1.25)
    y3 = jax.block_until_ready(degradation_forward(x3))
    ref3 = jnp.floor(jnp.clip(x3, 0.0, 1.0) * 255.0) / 255.0
    assert y3.shape == x3.shape
    assert jnp.max(jnp.abs(y3 - ref3)) < 1e-6

    print("KERNEL_OK")
</pallas_src>

<mosaic_0001>
module attributes {stable_mosaic.version = 11 : i64} {
  func.func @_degrade_kernel(%arg0: i32, %arg1: i32, %arg2: memref<1x2048xf32, #tpu.memory_space<vmem>>, %arg3: memref<1x2048xf32, #tpu.memory_space<vmem>>) attributes {dimension_semantics = [#tpu.dimension_semantics<parallel>, #tpu.dimension_semantics<parallel>], iteration_bounds = array<i64: 1, 1>, scalar_prefetch = 0 : i64, scratch_operands = 0 : i64, tpu.core_type = #tpu.core_type<tc>, window_params = [{transform_indices = @transform_0, window_bounds = array<i64: 1, 2048>}, {transform_indices = @transform_1, window_bounds = array<i64: 1, 2048>}]} {
    %c0 = arith.constant 0 : index
    %c0_0 = arith.constant 0 : index
    %0 = vector.load %arg2[%c0, %c0_0] : memref<1x2048xf32, #tpu.memory_space<vmem>>, vector<1x2048xf32>
    %cst = arith.constant 0.000000e+00 : f32
    %cst_1 = arith.constant 1.000000e+00 : f32
    %1 = vector.broadcast %cst : f32 to vector<1x2048xf32>
    %2 = arith.maximumf %1, %0 : vector<1x2048xf32>
    %3 = vector.broadcast %cst_1 : f32 to vector<1x2048xf32>
    %4 = arith.minimumf %3, %2 : vector<1x2048xf32>
    %cst_2 = arith.constant 2.550000e+02 : f32
    %5 = vector.broadcast %cst_2 : f32 to vector<1x2048xf32>
    %6 = arith.mulf %4, %5 : vector<1x2048xf32>
    %7 = math.floor %6 : vector<1x2048xf32>
    %cst_3 = arith.constant 0.00392156886 : f32
    %8 = vector.broadcast %cst_3 : f32 to vector<1x2048xf32>
    %9 = arith.mulf %7, %8 : vector<1x2048xf32>
    %c0_4 = arith.constant 0 : index
    %c0_5 = arith.constant 0 : index
    %10 = vector.load %arg3[%c0_4, %c0_5] : memref<1x2048xf32, #tpu.memory_space<vmem>>, vector<1x2048xf32>
    tpu.vector_store %arg3[%c0_4, %c0_5], %9 {strides = array<i32>} : memref<1x2048xf32, #tpu.memory_space<vmem>>, vector<1x2048xf32>,
    return
  }
  func.func @transform_0(%arg0: i32, %arg1: i32) -> (i32, i32) {
    %c0_i32 = arith.constant 0 : i32
    return %arg0, %arg1 : i32, i32
  }
  func.func @transform_1(%arg0: i32, %arg1: i32) -> (i32, i32) {
    %c0_i32 = arith.constant 0 : i32
    return %arg0, %arg1 : i32, i32
  }
}

</mosaic_0001>

<bundles_post_ra>
// kernel: tpu_custom_call.1
= control target key start
LH: loop header
LB: loop body
LE: loop exit
PB: predicated region body
PF: predicated region fallthrough
CT: control target
= control target key end

     0   :  { %6 = vsyncpa [#allocation3], 0  ;;  %s136_s0 = inlined_call_operand.hbm [shape: f32[1,2048], index: 0, kind: input, shape index: {}]   ;;  %s137_s1 = inlined_call_operand.hbm [shape: f32[1,2048], index: 1, kind: output, shape index: {}]  }
   0x1   :  { %7 = vsyncpa [#allocation4], 0  ;;  %s100_s6 = smov [#allocation2]   ;;  %s52_s10 = scalar_lea.hbm %s136_s0, 256 }
   0x2   :  { %s14_s7 = sshll.u32 %s100_s6, 4  ;;  %p53_p0 = scmp.ne.s32.totalorder %s136_s0, %s52_s10  ;;  %s15_s7 = int_to_ptr.vmem [resolvable:$true] %s14_s7 }
   0x3   :  { %p56_p1 = scmp.lt.u32.totalorder %s52_s10, %s136_s0 }
   0x5   :  { %p58_p2 = pnand %p56_p1, %p53_p0 }
   0x7   :  { %61 = shalt.err (!%p58_p2)
}
   0x8   :  { %s62_s15 = scalar_lea.vmem %s15_s7, 256  ;;  %p67_p4 = scmp.lt.s32.totalorder %s15_s7, %s15_s7 }
   0x9   :  { %p63_p3 = scmp.ne.s32.totalorder %s15_s7, %s62_s15  ;;  %p68_p5 = scmp.lt.s32.totalorder %s62_s15, %s62_s15 }
   0xb   :  { %p69_p6 = por %p68_p5, %p67_p4 }
   0xd   :  { %p70_p7 = pnand %p69_p6, %p63_p3 }
   0xf   :  { %73 = shalt.err (!%p70_p7)
}
  0x10   :  { %17 = dma.hbm_to_vmem [thread:$0]  %s136_s0, 256, %s15_s7, [#allocation3]  }
  0x11   :  { %96 = dma.done.wait [#allocation3], 256  }
  0x12   :  { %97 = vsyncadd [#allocation3], 4294967040  ;;  %v21_v0 = vld [vmem:[#allocation2] sm:$0xff]  ;;  %v22_v1 = vld [vmem:[#allocation2 + $0x8] sm:$0xff]  ;;  %s101_s18 = smov [#allocation5]  }
  0x13   :  { %v23_v2 = vmax.f32 %v21_v0, 0.0  ;;  %v24_v3 = vmax.f32 %v22_v1, 0.0  ;;  %s41_s19 = sshll.u32 %s101_s18, 4  ;;  %s42_s19 = int_to_ptr.vmem [resolvable:$true] %s41_s19 }
  0x14   :  { %s74_s0 = scalar_lea.vmem %s42_s19, 256  ;;  %p79_p9 = scmp.lt.s32.totalorder %s42_s19, %s42_s19 }
  0x15   :  { %v25_v4 = vmin.f32 %v23_v2, 1.0  ;;  %v26_v5 = vmin.f32 %v24_v3, 1.0  ;;  %p75_p8 = scmp.ne.s32.totalorder %s42_s19, %s74_s0  ;;  %p80_p10 = scmp.lt.s32.totalorder %s74_s0, %s74_s0 }
  0x17   :  { %v27_v6 = vmul.f32 255.0, %v25_v4  ;;  %v28_v7 = vmul.f32 255.0, %v26_v5  ;;  %p81_p11 = por %p80_p10, %p79_p9 }
  0x19   :  { %v29_v8 = vfloor.f32 %v27_v6  ;;  %v30_v9 = vfloor.f32 %v28_v7  ;;  %p82_p12 = pnand %p81_p11, %p75_p8 }
  0x1b   :  { %v31_v10 = vmul.f32 0.003921569, %v29_v8  ;;  %v32_v11 = vmul.f32 0.003921569, %v30_v9 }
  0x1d   :  { %33 = vst [vmem:[#allocation5] sm:$0xff] %v31_v10  ;;  %34 = vst [vmem:[#allocation5 + $0x8] sm:$0xff] %v32_v11 }
  0x1e   :  { %85 = shalt.err (!%p82_p12)
}
  0x1f   :  { %s86_s22 = scalar_lea.hbm %s137_s1, 256 }
  0x20   :  { %p87_p13 = scmp.ne.s32.totalorder %s137_s1, %s86_s22  ;;  %p90_p0 = scmp.lt.u32.totalorder %s86_s22, %s137_s1 }
  0x22   :  { %p92_p1 = pnand %p90_p0, %p87_p13 }
  0x24   :  { %95 = shalt.err (!%p92_p1)
}
  0x25   :  { %44 = dma.vmem_to_hbm [thread:$0]  %s42_s19, 256, %s137_s1, [#allocation4]  }
  0x26   :  { %98 = dma.done.wait [#allocation4], 256  }
  0x27   :  { %99 = vsyncadd [#allocation4], 4294967040 }
  0x28   :  { %48 = vsyncpa [#allocation3], 1 }
  0x29   :  { %49 = vsyncpa [#allocation4], 1 }

</bundles_post_ra>
